<compile_context>
chip_gen: v7x
topology: tpu7x:2x2x1
jax: 0.10.0
libtpu: 0.0.40
codegen_flags: <defaults>
</compile_context>

<pallas_src>
import functools
import math

import numpy as np

import jax
import jax.numpy as jnp
from jax.experimental import pallas as pl
from jax.experimental.pallas import tpu as pltpu


def _bone_length_loss_kernel(jout_ref, jgt_ref, edge_ref, group_ref, bsum_ref,
                             loss_ref, *, hi_precision_edge):
    """Per-batch-tile bone-length loss.

    jout_ref, jgt_ref : (TR, g*J*D)   lane-folded joints (input dtype)
    edge_ref          : (g*J*D, g*K*D) kron(I_g, kron(incidence, I_D)), input dtype
    group_ref         : (g*K*D, g*K)   kron(I_g, kron(I_K, ones(D,1))), f32
    bsum_ref          : (g*K, g)       kron(I_g, ones(K,1)), f32
    loss_ref          : (TR, g)        per-row / per-fold loss (f32)
    """
    f32 = jnp.float32
    hi = jax.lax.Precision.HIGHEST
    edge_prec = hi if hi_precision_edge else None

    jout = jout_ref[...]          # no upcast: bf16 goes straight to the MXU
    jgt = jgt_ref[...]
    edge = edge_ref[...]
    group = group_ref[...]
    bsum = bsum_ref[...]

    # Bone difference vectors, flattened over (fold, bone, coord): (TR, g*K*D).
    bo = jnp.dot(jout, edge, preferred_element_type=f32, precision=edge_prec)
    bg = jnp.dot(jgt, edge, preferred_element_type=f32, precision=edge_prec)

    # Squared bone lengths: (TR, g*K).  (accumulate in f32)
    sq_o = jnp.dot(bo * bo, group, preferred_element_type=f32, precision=hi)
    sq_g = jnp.dot(bg * bg, group, preferred_element_type=f32, precision=hi)

    # Length error, then per-(row, fold) sum over bones via matmul: (TR, g).
    diff = jnp.sqrt(sq_o) - jnp.sqrt(sq_g)
    loss_ref[...] = jnp.dot(diff * diff, bsum,
                            preferred_element_type=f32, precision=hi)


def bone_length_loss(joint_out: jax.Array,
                     joint_gt: jax.Array,
                     skeleton) -> jax.Array:
    """loss[b] = sum_k (||out[b,j0k]-out[b,j1k]|| - ||gt[b,j0k]-gt[b,j1k]||)^2."""
    assert joint_out.shape == joint_gt.shape
    B, J, D = joint_out.shape
    dtype = joint_out.dtype
    assert jnp.issubdtype(dtype, jnp.floating)
    if joint_gt.dtype != dtype:
        joint_gt = joint_gt.astype(dtype)

    skel = np.asarray(skeleton, dtype=np.int64).reshape(-1, 2)
    K = skel.shape[0]

    # Lane-fold factor: pack g consecutive batch rows into the lane axis
    # (g=8 for typical batches -> 8*J*D lanes, a multiple of 128 when J*D=48).
    g = math.gcd(B, 8)
    R = B // g
    L = g * J * D

    # Static skeleton -> constant matrices (tiny, built once at trace time).
    inc = np.zeros((J, K), np.float32)
    inc[skel[:, 0], np.arange(K)] += 1.0
    inc[skel[:, 1], np.arange(K)] -= 1.0
    eye_g = np.eye(g, dtype=np.float32)
    edge_np = np.kron(eye_g, np.kron(inc, np.eye(D, dtype=np.float32)))        # (L, g*K*D)
    group_np = np.kron(eye_g, np.kron(np.eye(K, dtype=np.float32),
                                      np.ones((D, 1), np.float32)))            # (g*K*D, g*K)
    bsum_np = np.kron(eye_g, np.ones((K, 1), np.float32))                      # (g*K, g)

    edge = jnp.asarray(edge_np, dtype=dtype)     # {+1,-1,0}: exact in bf16/f32
    group = jnp.asarray(group_np)                # f32 (accumulator side stays f32)
    bsum = jnp.asarray(bsum_np)                  # f32

    # Metadata-only lane-dense reshape (no copy, no padding).
    jo = joint_out.reshape(R, L)
    jg = joint_gt.reshape(R, L)

    # Batch-row tile: ~2 MiB of *physical* VMEM per (operand, buffer), i.e.
    # account for lane padding to a multiple of 128 (matters on v7x's 64 MiB).
    elem = jnp.dtype(dtype).itemsize
    lane_phys = ((L + 127) // 128) * 128
    if R <= 8:
        tr = R                                           # single full block
    else:
        tr = (2 * 1024 * 1024) // (lane_phys * elem)
        tr = max(8, min(4096, (tr // 8) * 8))
        # Keep >= 2 tiles so dimension_semantics=("parallel",) can split the
        # batch loop across v7x's two TensorCores (no-op on v5e/v6e).
        half = ((pl.cdiv(R, 2) + 7) // 8) * 8
        tr = max(8, min(tr, half))
    n_tiles = pl.cdiv(R, tr)   # ragged final block: OOB reads are garbage but
                               # only feed OOB output rows, which Pallas masks.

    kernel = functools.partial(_bone_length_loss_kernel,
                               hi_precision_edge=(dtype == jnp.float32))

    loss2d = pl.pallas_call(
        kernel,
        out_shape=jax.ShapeDtypeStruct((R, g), jnp.float32),
        grid=(n_tiles,),
        in_specs=[
            pl.BlockSpec((tr, L), lambda i: (i, 0)),
            pl.BlockSpec((tr, L), lambda i: (i, 0)),
            pl.BlockSpec(edge.shape, lambda i: (0, 0)),
            pl.BlockSpec(group.shape, lambda i: (0, 0)),
            pl.BlockSpec(bsum.shape, lambda i: (0, 0)),
        ],
        out_specs=pl.BlockSpec((tr, g), lambda i: (i, 0)),
        compiler_params=pltpu.CompilerParams(
            dimension_semantics=("parallel",),           # v7x 2-TC batch split
            vmem_limit_bytes=32 * 1024 * 1024,           # safe on v5e/v6e/v7x
        ),
    )(jo, jg, edge, group, bsum)

    # Row r, lane s  ->  batch element r*g + s.
    return loss2d.reshape(B)


def _reference(joint_out, joint_gt, skeleton):
    """Plain-JAX reference of the PyTorch semantics (fp32)."""
    skel = np.asarray(skeleton)
    jo = joint_out.astype(jnp.float32)
    jg = joint_gt.astype(jnp.float32)
    d_out = jo[:, skel[:, 0], :] - jo[:, skel[:, 1], :]
    d_gt = jg[:, skel[:, 0], :] - jg[:, skel[:, 1], :]
    len_out = jnp.sqrt(jnp.sum(d_out ** 2, axis=-1))
    len_gt = jnp.sqrt(jnp.sum(d_gt ** 2, axis=-1))
    return jnp.sum((len_out - len_gt) ** 2, axis=-1)


if __name__ == "__main__":
    key = jax.random.PRNGKey(0)
    k1, k2, k3, k4 = jax.random.split(key, 4)

    # Shapes consistent with the module: joints=16, coords=3, chain skeleton (15 bones).
    J, D = 16, 3
    skeleton = [(i, i + 1) for i in range(J - 1)]

    # Case 1: tiny batch (B=2).
    B1 = 2
    jo1 = jax.random.normal(k1, (B1, J, D), dtype=jnp.float32)
    jg1 = jax.random.normal(k2, (B1, J, D), dtype=jnp.float32)
    loss1 = jax.block_until_ready(bone_length_loss(jo1, jg1, skeleton))
    ref1 = _reference(jo1, jg1, skeleton)
    assert loss1.shape == (B1,)
    assert jnp.allclose(loss1, ref1, rtol=2e-3, atol=2e-3)

    # Case 2: batch not divisible by the tile -> exercises the ragged final
    # block path (no wrapper-side padding).
    B2 = 30
    jo2 = jax.random.normal(k3, (B2, J, D), dtype=jnp.float32)
    jg2 = jax.random.normal(k4, (B2, J, D), dtype=jnp.float32)
    loss2 = jax.block_until_ready(bone_length_loss(jo2, jg2, skeleton))
    ref2 = _reference(jo2, jg2, skeleton)
    assert loss2.shape == (B2,)
    assert jnp.allclose(loss2, ref2, rtol=2e-3, atol=2e-3)

    print("KERNEL_OK")
</pallas_src>

<mosaic_0001>
module attributes {stable_mosaic.version = 11 : i64} {
  func.func @_bone_length_loss_kernel(%arg0: i32, %arg1: memref<1x96xf32, #tpu.memory_space<vmem>>, %arg2: memref<1x96xf32, #tpu.memory_space<vmem>>, %arg3: memref<96x90xf32, #tpu.memory_space<vmem>>, %arg4: memref<90x30xf32, #tpu.memory_space<vmem>>, %arg5: memref<30x2xf32, #tpu.memory_space<vmem>>, %arg6: memref<1x2xf32, #tpu.memory_space<vmem>>) attributes {dimension_semantics = [#tpu.dimension_semantics<parallel>], iteration_bounds = array<i64: 1>, scalar_prefetch = 0 : i64, scratch_operands = 0 : i64, tpu.core_type = #tpu.core_type<tc>, window_params = [{transform_indices = @transform_0, window_bounds = array<i64: 1, 96>}, {transform_indices = @transform_1, window_bounds = array<i64: 1, 96>}, {pipeline_mode = #tpu.pipeline_mode<synchronous>, transform_indices = @transform_2, window_bounds = array<i64: 96, 90>}, {pipeline_mode = #tpu.pipeline_mode<synchronous>, transform_indices = @transform_3, window_bounds = array<i64: 90, 30>}, {pipeline_mode = #tpu.pipeline_mode<synchronous>, transform_indices = @transform_4, window_bounds = array<i64: 30, 2>}, {transform_indices = @transform_5, window_bounds = array<i64: 1, 2>}]} {
    %c0 = arith.constant 0 : index
    %c0_0 = arith.constant 0 : index
    %0 = vector.load %arg1[%c0, %c0_0] : memref<1x96xf32, #tpu.memory_space<vmem>>, vector<1x96xf32>
    %c0_1 = arith.constant 0 : index
    %c0_2 = arith.constant 0 : index
    %1 = vector.load %arg2[%c0_1, %c0_2] : memref<1x96xf32, #tpu.memory_space<vmem>>, vector<1x96xf32>
    %c0_3 = arith.constant 0 : index
    %c0_4 = arith.constant 0 : index
    %2 = vector.load %arg3[%c0_3, %c0_4] : memref<96x90xf32, #tpu.memory_space<vmem>>, vector<96x90xf32>
    %c0_5 = arith.constant 0 : index
    %c0_6 = arith.constant 0 : index
    %3 = vector.load %arg4[%c0_5, %c0_6] : memref<90x30xf32, #tpu.memory_space<vmem>>, vector<90x30xf32>
    %c0_7 = arith.constant 0 : index
    %c0_8 = arith.constant 0 : index
    %4 = vector.load %arg5[%c0_7, %c0_8] : memref<30x2xf32, #tpu.memory_space<vmem>>, vector<30x2xf32>
    %cst = arith.constant dense<0.000000e+00> : vector<1x90xf32>
    %5 = tpu.matmul %0, %2, %cst {dimension_numbers = #tpu.dot_dimension_numbers<[1], [0], [0], [1], [0, 0, 1, 1], [], []>, precision = #tpu.contract_precision<fp32>} : vector<1x96xf32>, vector<96x90xf32>, vector<1x90xf32> -> vector<1x90xf32>
    %cst_9 = arith.constant dense<0.000000e+00> : vector<1x90xf32>
    %6 = tpu.matmul %1, %2, %cst_9 {dimension_numbers = #tpu.dot_dimension_numbers<[1], [0], [0], [1], [0, 0, 1, 1], [], []>, precision = #tpu.contract_precision<fp32>} : vector<1x96xf32>, vector<96x90xf32>, vector<1x90xf32> -> vector<1x90xf32>
    %7 = arith.mulf %5, %5 : vector<1x90xf32>
    %cst_10 = arith.constant dense<0.000000e+00> : vector<1x30xf32>
    %8 = tpu.matmul %7, %3, %cst_10 {dimension_numbers = #tpu.dot_dimension_numbers<[1], [0], [0], [1], [0, 0, 1, 1], [], []>, precision = #tpu.contract_precision<fp32>} : vector<1x90xf32>, vector<90x30xf32>, vector<1x30xf32> -> vector<1x30xf32>
    %9 = arith.mulf %6, %6 : vector<1x90xf32>
    %cst_11 = arith.constant dense<0.000000e+00> : vector<1x30xf32>
    %10 = tpu.matmul %9, %3, %cst_11 {dimension_numbers = #tpu.dot_dimension_numbers<[1], [0], [0], [1], [0, 0, 1, 1], [], []>, precision = #tpu.contract_precision<fp32>} : vector<1x90xf32>, vector<90x30xf32>, vector<1x30xf32> -> vector<1x30xf32>
    %11 = math.sqrt %8 : vector<1x30xf32>
    %12 = math.sqrt %10 : vector<1x30xf32>
    %13 = arith.subf %11, %12 : vector<1x30xf32>
    %14 = arith.mulf %13, %13 : vector<1x30xf32>
    %cst_12 = arith.constant dense<0.000000e+00> : vector<1x2xf32>
    %15 = tpu.matmul %14, %4, %cst_12 {dimension_numbers = #tpu.dot_dimension_numbers<[1], [0], [0], [1], [0, 0, 1, 1], [], []>, precision = #tpu.contract_precision<fp32>} : vector<1x30xf32>, vector<30x2xf32>, vector<1x2xf32> -> vector<1x2xf32>
    %c0_13 = arith.constant 0 : index
    %c0_14 = arith.constant 0 : index
    %16 = vector.load %arg6[%c0_13, %c0_14] : memref<1x2xf32, #tpu.memory_space<vmem>>, vector<1x2xf32>
    tpu.vector_store %arg6[%c0_13, %c0_14], %15 {strides = array<i32>} : memref<1x2xf32, #tpu.memory_space<vmem>>, vector<1x2xf32>,
    return
  }
  func.func @transform_0(%arg0: i32) -> (i32, i32) {
    %c0_i32 = arith.constant 0 : i32
    %c0_i32_0 = arith.constant 0 : i32
    return %arg0, %c0_i32 : i32, i32
  }
  func.func @transform_1(%arg0: i32) -> (i32, i32) {
    %c0_i32 = arith.constant 0 : i32
    %c0_i32_0 = arith.constant 0 : i32
    return %arg0, %c0_i32 : i32, i32
  }
  func.func @transform_2(%arg0: i32) -> (i32, i32) {
    %c0_i32 = arith.constant 0 : i32
    %c0_i32_0 = arith.constant 0 : i32
    %c0_i32_1 = arith.constant 0 : i32
    return %c0_i32, %c0_i32_0 : i32, i32
  }
  func.func @transform_3(%arg0: i32) -> (i32, i32) {
    %c0_i32 = arith.constant 0 : i32
    %c0_i32_0 = arith.constant 0 : i32
    %c0_i32_1 = arith.constant 0 : i32
    return %c0_i32, %c0_i32_0 : i32, i32
  }
  func.func @transform_4(%arg0: i32) -> (i32, i32) {
    %c0_i32 = arith.constant 0 : i32
    %c0_i32_0 = arith.constant 0 : i32
    %c0_i32_1 = arith.constant 0 : i32
    return %c0_i32, %c0_i32_0 : i32, i32
  }
  func.func @transform_5(%arg0: i32) -> (i32, i32) {
    %c0_i32 = arith.constant 0 : i32
    %c0_i32_0 = arith.constant 0 : i32
    return %arg0, %c0_i32 : i32, i32
  }
}

</mosaic_0001>

<bundles_post_ra>
// kernel: tpu_custom_call.1
= control target key start
LH: loop header
LB: loop body
LE: loop exit
PB: predicated region body
PF: predicated region fallthrough
CT: control target
= control target key end

     0   :  { %v4557_v3 = vmov 0.0|0.0   ;;  %vm4558_vm0 = vmmov 0   ;;  %v4559_v15 = vmov 0.0   ;;  %s5390_s0 = inlined_call_operand.vmem [shape: f32[1,96], index: 0, kind: input, shape index: {}]   ;;  %s5391_s1 = inlined_call_operand.vmem [shape: f32[1,96], index: 1, kind: input, shape index: {}]   ;;  %s5392_s2 = inlined_call_operand.vmem [shape: f32[96,90], index: 2, kind: input, shape index: {}]   ;;  %s5393_s3 = inlined_call_operand.vmem [shape: f32[90,30], index: 3, kind: input, shape index: {}]   ;;  %s5394_s4 = inlined_call_operand.vmem [shape: f32[30,2], index: 4, kind: input, shape index: {}]   ;;  %s5395_s5 = inlined_call_operand.hbm [shape: f32[1,2], index: 5, kind: output, shape index: {}]  }
   0x1   :  { %v23_v0 = vld [vmem:[%s5392_s2] sm:$0xff]  ;;  %v24_v1 = vld [vmem:[%s5392_s2 + $0x8] sm:$0xff]  ;;  %v25_v2 = vld [vmem:[%s5392_s2 + $0x10] sm:$0xff]  ;;  %4008 = vmatprep.subr.bf16.mxu1 %v4557_v3  ;;  %4026 = vmatprep.subr.bf16.mxu0 %v4557_v3 }
   0x2   :  { %v56_v4 = vand.u32 4294901760, %v23_v0  ;;  %v59_v5 = vand.u32 4294901760, %v24_v1  ;;  %v26_v6 = vld [vmem:[%s5392_s2 + $0x18] sm:$0xff]  ;;  %v62_v7 = vand.u32 4294901760, %v25_v2  ;;  %v27_v8 = vld [vmem:[%s5392_s2 + $0x20] sm:$0xff]  ;;  %v28_v9 = vld [vmem:[%s5392_s2 + $0x28] sm:$0xff]  ;;  %3318 = vmatprep.mubr.msk.f32.mxu1 %vm4558_vm0, %v4559_v15  ;;  %3345 = vmatprep.mubr.msk.f32.mxu0 %vm4558_vm0, %v4559_v15 }
   0x3   :  { %v65_v10 = vand.u32 4294901760, %v26_v6  ;;  %v68_v11 = vand.u32 4294901760, %v27_v8  ;;  %v71_v12 = vand.u32 4294901760, %v28_v9  ;;  %v29_v13 = vld [vmem:[%s5392_s2 + $0x30] sm:$0xff]  ;;  %v30_v14 = vld [vmem:[%s5392_s2 + $0x38] sm:$0xff]  ;;  %v31_v19 = vld [vmem:[%s5392_s2 + $0x40] sm:$0xff] }
   0x4   :  { %v4621_v16 = vpack.c.bf16 %v59_v5, %v56_v4  ;;  %v4623_v17 = vsub.f32 %v23_v0, %v56_v4  ;;  %v4625_v18 = vsub.f32 %v24_v1, %v59_v5  ;;  %v74_v20 = vand.u32 4294901760, %v29_v13  ;;  %v32_v27 = vld [vmem:[%s5392_s2 + $0x48] sm:$0xff] }
   0x5   :  { %v77_v21 = vand.u32 4294901760, %v30_v14  ;;  %v4630_v22 = vsub.f32 %v25_v2, %v62_v7  ;;  %v4633_v23 = vpack.c.bf16 %v65_v10, %v62_v7  ;;  %v4637_v26 = vsub.f32 %v26_v6, %v65_v10 }
   0x6   :  { %4010 = vmatpush3.bf16.msra.mxu1 %v4621_v16  ;;  %v145_v24 = vand.u32 4294901760, %v4623_v17  ;;  %v152_v25 = vand.u32 4294901760, %v4625_v18 }
   0x7   :  { %10 = vsyncpa [#allocation3], 0  ;;  %4011 = vmatprep.subr.bf16.mxu1 %v4557_v3  ;;  %v4643_v28 = vpack.c.bf16 %v71_v12, %v68_v11  ;;  %v159_v29 = vand.u32 4294901760, %v4630_v22  ;;  %v80_v30 = vand.u32 4294901760, %v31_v19  ;;  %v4646_v31 = vsub.f32 %v27_v8, %v68_v11  ;;  %v33_v36 = vld [vmem:[%s5392_s2 + $0x50] sm:$0xff]  ;;  %v34_v45 = vld [vmem:[%s5392_s2 + $0x58] sm:$0xff] }
   0x8   :  { %v146_v32 = vsub.f32 %v4623_v17, %v145_v24  ;;  %v153_v33 = vsub.f32 %v4625_v18, %v152_v25  ;;  %v166_v34 = vand.u32 4294901760, %v4637_v26  ;;  %v4655_v35 = vsub.f32 %v28_v9, %v71_v12  ;;  %v21_v50 = vld [vmem:[%s5390_s0] sm:$0x1] }
   0x9   :  { %v4660_v37 = vpack.c.bf16 %v77_v21, %v74_v20  ;;  %v160_v38 = vsub.f32 %v4630_v22, %v159_v29  ;;  %v83_v39 = vand.u32 4294901760, %v32_v27  ;;  %v173_v40 = vand.u32 4294901760, %v4646_v31 }
   0xa   :  { %4013 = vmatpush3.bf16.msra.mxu1 %v4633_v23  ;;  %v147_v41 = vand.u32 4294901760, %v146_v32  ;;  %v154_v42 = vand.u32 4294901760, %v153_v33  ;;  %v167_v43 = vsub.f32 %v4637_v26, %v166_v34  ;;  %v180_v44 = vand.u32 4294901760, %v4655_v35 }
   0xb   :  { %4014 = vmatprep.subr.bf16.mxu1 %v4557_v3  ;;  %v161_v46 = vand.u32 4294901760, %v160_v38  ;;  %v174_v47 = vsub.f32 %v4646_v31, %v173_v40  ;;  %v86_v48 = vand.u32 4294901760, %v33_v36  ;;  %v4678_v49 = vsub.f32 %v29_v13, %v74_v20 }
   0xc   :  { %v4683_v51 = vpack.c.bf16 %v154_v42, %v147_v41  ;;  %v168_v52 = vand.u32 4294901760, %v167_v43  ;;  %v181_v53 = vsub.f32 %v4655_v35, %v180_v44  ;;  %v4686_v54 = vsub.f32 %v30_v14, %v77_v21 }
   0xd   :  { %v175_v55 = vand.u32 4294901760, %v174_v47  ;;  %v89_v56 = vand.u32 4294901760, %v34_v45  ;;  %v187_v57 = vand.u32 4294901760, %v4678_v49  ;;  %vm51_vm1 = vcmask 785408  }
   0xe   :  { %4016 = vmatpush3.bf16.msra.mxu1 %v4643_v28  ;;  %4028 = vmatpush3.bf16.msra.mxu0 %v4683_v51  ;;  %v4691_v58 = vpack.c.bf16 %v168_v52, %v161_v46  ;;  %v182_v59 = vand.u32 4294901760, %v181_v53  ;;  %v194_v60 = vand.u32 4294901760, %v4686_v54  ;;  %v53_v61 = vsel %vm51_vm1, %v21_v50, 0 }
   0xf   :  { %4017 = vmatprep.subr.bf16.mxu1 %v4557_v3  ;;  %4029 = vmatprep.subr.bf16.mxu0 %v4557_v3  ;;  %v188_v62 = vsub.f32 %v4678_v49, %v187_v57  ;;  %v4698_v63 = vand.u32 4294901760, %v53_v61  ;;  %v4700_v0 = vsub.f32 %v31_v19, %v80_v30  ;;  %v4702_v1 = vpack.c.bf16 %v83_v39, %v80_v30 }
  0x10   :  { %v195_v2 = vsub.f32 %v4686_v54, %v194_v60  ;;  %v4705_v4 = vsub.f32 %v32_v27, %v83_v39  ;;  %v4711_v8 = vsub.f32 %v33_v36, %v86_v48  ;;  %v4715_v9 = vpack.c.bf16 %v182_v59, %v175_v55  ;;  %v4924_v59 = vld [vmem:[%s5393_s3 + $0x18] sm:$0xff] }
  0x11   :  { %v189_v5 = vand.u32 4294901760, %v188_v62  ;;  %v4708_v6 = vsub.f32 %v53_v61, %v4698_v63  ;;  %v201_v7 = vand.u32 4294901760, %v4700_v0  ;;  %v4718_v12 = vsub.f32 %v34_v45, %v89_v56 }
  0x12   :  { %4019 = vmatpush3.bf16.msra.mxu1 %v4660_v37  ;;  %4031 = vmatpush3.bf16.msra.mxu0 %v4691_v58  ;;  %v196_v10 = vand.u32 4294901760, %v195_v2  ;;  %v208_v11 = vand.u32 4294901760, %v4705_v4  ;;  %v215_v19 = vand.u32 4294901760, %v4711_v8  ;;  %v4727_v27 = vpack.c.bf16 %v89_v56, %v86_v48  ;;  %v42_v2 = vld [vmem:[%s5393_s3 + $0x38] sm:$0xff] }
  0x13   :  { %4020 = vmatprep.subr.bf16.mxu1 %v4557_v3  ;;  %4032 = vmatprep.subr.bf16.mxu0 %v4557_v3  ;;  %v134_v13 = vand.u32 4294901760, %v4708_v6  ;;  %v202_v14 = vsub.f32 %v4700_v0, %v201_v7  ;;  %v222_v21 = vand.u32 4294901760, %v4718_v12  ;;  %v4744_v41 = vpack.c.bf16 %v152_v25, %v145_v24 }
  0x14   :  { %v209_v20 = vsub.f32 %v4705_v4, %v208_v11  ;;  %v4729_v30 = vpack.c.bf16 %v196_v10, %v189_v5  ;;  %v216_v38 = vsub.f32 %v4711_v8, %v215_v19  ;;  %v4750_v43 = vpack.c.bf16 %v166_v34, %v159_v29  ;;  %v22_v29 = vld [vmem:[%s5391_s1] sm:$0x1] }
  0x15   :  { %v135_v32 = vsub.f32 %v4708_v6, %v134_v13  ;;  %v203_v33 = vand.u32 4294901760, %v202_v14  ;;  %v223_v39 = vsub.f32 %v4718_v12, %v222_v21  ;;  %v4754_v45 = vpack.c.bf16 %v180_v44, %v173_v40 }
  0x16   :  { %4022 = vmatpush3.bf16.msra.mxu1 %v4702_v1  ;;  %4034 = vmatpush3.bf16.msra.mxu0 %v4715_v9  ;;  %v210_v36 = vand.u32 4294901760, %v209_v20  ;;  %v4756_v46 = vpack.c.bf16 %v194_v60, %v187_v57  ;;  %v4758_v47 = vpack.c.bf16 %v208_v11, %v201_v7  ;;  %v4760_v48 = vpack.c.bf16 %v222_v21, %v215_v19  ;;  %v43_v7 = vld [vmem:[%s5393_s3 + $0x40] sm:$0xff] }
  0x17   :  { %4023 = vmatprep.subr.bf16.mxu1 %v4557_v3  ;;  %4035 = vmatprep.subr.bf16.mxu0 %v4557_v3  ;;  %v136_v42 = vand.u32 4294901760, %v135_v32  ;;  %v217_v25 = vand.u32 4294901760, %v216_v38  ;;  %v224_v50 = vand.u32 4294901760, %v223_v39  ;;  %v645_v34 = vsel %vm51_vm1, %v22_v29, 0 }
  0x18   :  { %v4764_v24 = vpack.c.bf16 %v210_v36, %v203_v33  ;;  %v4778_v44 = vand.u32 4294901760, %v645_v34  ;;  %v4045_v52 = vpack.c.bf16 %v4625_v18, %v4623_v17  ;;  %v4048_v55 = vpack.c.bf16 %v4637_v26, %v4630_v22 }
  0x19   :  { %v4042_v40 = vpack.c.bf16 %v224_v50, %v217_v25  ;;  %v4051_v18 = vpack.c.bf16 %v4655_v35, %v4646_v31  ;;  %v4054_v26 = vpack.c.bf16 %v4686_v54, %v4678_v49  ;;  %v4057_v31 = vpack.c.bf16 %v4705_v4, %v4700_v0  ;;  %v4901_v49 = vld [vmem:[%s5393_s3] sm:$0xff] }
  0x1a   :  { %4025 = vmatpush3.bf16.msra.mxu1 %v4727_v27  ;;  %4037 = vmatpush3.bf16.msra.mxu0 %v4729_v30  ;;  %v4787_v53 = vsub.f32 %v645_v34, %v4778_v44  ;;  %v4060_v35 = vpack.c.bf16 %v4718_v12, %v4711_v8  ;;  %v1246_v54 = vand.u32 4294901760, %v4901_v49  ;;  %v1255_v62 = vand.u32 4294901760, %v4924_v59  ;;  %v44_v8 = vld [vmem:[%s5393_s3 + $0x48] sm:$0xff]  ;;  %v46_v12 = vld [vmem:[%s5393_s3 + $0x58] sm:$0x3] }
  0x1b   :  { %4038 = vmatprep.subr.bf16.mxu0 %v4557_v3  ;;  %4116 = vmatprep.subr.bf16.mxu1 %v4557_v3  ;;  %v1267_v5 = vand.u32 4294901760, %v42_v2  ;;  %v1273_v10 = vand.u32 4294901760, %v44_v8  ;;  %vm1241_vm2 = vcmask 1041408   ;;  %vm1237_vm3 = vcmask 736256  }
  0x1c   :  { %v726_v17 = vand.u32 4294901760, %v4787_v53  ;;  %v1243_v14 = vsel %vm1241_vm2, %v46_v12, 0  ;;  %vm2447_vm4 = vcmask 1045504   ;;  %vm2443_vm9 = vcmask 244736  }
  0x1d   :  { %3319 = vmatmul.mubr.f32.vlgmr.msra.gmra.mrb[0].mxu1 %v136_v42  ;;  %v1279_v20 = vand.u32 4294901760, %v1243_v14  ;;  %v5056_v25 = vsub.f32 %v44_v8, %v1273_v10  ;;  %vm2936_vm10 = vcmask 8192  }
  0x1e   :  { %4040 = vmatpush3.bf16.msra.mxu0 %v4764_v24  ;;  %4118 = vmatpush3.bf16.msra.mxu1 %v4621_v16  ;;  %v727_v22 = vsub.f32 %v4787_v53, %v726_v17 }
  0x1f   :  { %4041 = vmatprep.subr.bf16.mxu0 %v4557_v3  ;;  %4119 = vmatprep.subr.bf16.mxu1 %v4557_v3 }
  0x20   :  { %3480 = vmatprep.mubr.msk.f32.mxu1 %vm4558_vm0, %v4559_v15  ;;  %v728_v56 = vand.u32 4294901760, %v727_v22  ;;  %v5071_v22 = vsub.f32 %v1243_v14, %v1279_v20 }
  0x22   :  { %4043 = vmatpush3.bf16.msra.mxu0 %v4042_v40  ;;  %4121 = vmatpush3.bf16.msra.mxu1 %v4633_v23 }
  0x23   :  { %4044 = vmatprep.subr.bf16.mxu0 %v4557_v3  ;;  %4122 = vmatprep.subr.bf16.mxu1 %v4557_v3 }
  0x25   :  { %3346 = vmatmul.mubr.f32.vlgmr.msra.gmra.mrb[0].mxu0 %v4698_v63 }
  0x26   :  { %4046 = vmatpush3.bf16.msra.mxu0 %v4045_v52  ;;  %4124 = vmatpush3.bf16.msra.mxu1 %v4643_v28 }
  0x27   :  { %4047 = vmatprep.subr.bf16.mxu0 %v4557_v3  ;;  %4125 = vmatprep.subr.bf16.mxu1 %v4557_v3 }
  0x28   :  { %3372 = vmatprep.mubr.msk.f32.mxu0 %vm4558_vm0, %v4559_v15 }
  0x2a   :  { %4049 = vmatpush3.bf16.msra.mxu0 %v4048_v55  ;;  %4127 = vmatpush3.bf16.msra.mxu1 %v4660_v37 }
  0x2b   :  { %4050 = vmatprep.subr.bf16.mxu0 %v4557_v3  ;;  %4128 = vmatprep.subr.bf16.mxu1 %v4557_v3 }
  0x2e   :  { %4052 = vmatpush3.bf16.msra.mxu0 %v4051_v18  ;;  %4130 = vmatpush3.bf16.msra.mxu1 %v4702_v1 }
  0x2f   :  { %4053 = vmatprep.subr.bf16.mxu0 %v4557_v3  ;;  %4131 = vmatprep.subr.bf16.mxu1 %v4557_v3 }
  0x32   :  { %4055 = vmatpush3.bf16.msra.mxu0 %v4054_v26  ;;  %4133 = vmatpush3.bf16.msra.mxu1 %v4727_v27 }
  0x33   :  { %4056 = vmatprep.subr.bf16.mxu0 %v4557_v3  ;;  %4134 = vmatprep.subr.bf16.mxu1 %v4557_v3 }
  0x35   :  { %3481 = vmatmul.mubr.f32.vlgmr.msra.gmra.mrb[2].mxu1 %v728_v56 }
  0x36   :  { %4058 = vmatpush3.bf16.msra.mxu0 %v4057_v31  ;;  %4136 = vmatpush3.bf16.msra.mxu1 %v4683_v51  ;;  %v4906_v51 = vld [vmem:[%s5393_s3 + $0x8] sm:$0xff] }
  0x37   :  { %4059 = vmatprep.subr.bf16.mxu0 %v4557_v3  ;;  %4137 = vmatprep.subr.bf16.mxu1 %v4557_v3  ;;  %v1249_v57 = vand.u32 4294901760, %v4906_v51 }
  0x38   :  { %3507 = vmatprep.mubr.msk.f32.mxu1 %vm4558_vm0, %v4559_v15 }
  0x39   :  { %v4934_v60 = vpack.c.bf16 %v1249_v57, %v1246_v54  ;;  %v5111_v12 = vsub.f32 %v4906_v51, %v1249_v57 }
  0x3a   :  { %4061 = vmatpush3.bf16.msra.mxu0 %v4060_v35  ;;  %4139 = vmatpush3.bf16.msra.mxu1 %v4691_v58  ;;  %v4919_v58 = vld [vmem:[%s5393_s3 + $0x10] sm:$0xff] }
  0x3b   :  { %4062 = vmatprep.subr.bf16.mxu0 %v4557_v3  ;;  %4140 = vmatprep.subr.bf16.mxu1 %v4557_v3  ;;  %v1252_v61 = vand.u32 4294901760, %v4919_v58 }
  0x3d   :  { %3373 = vmatmul.mubr.f32.vlgmr.msra.gmra.mrb[0].mxu0 %v4708_v6  ;;  %v4947_v0 = vpack.c.bf16 %v1255_v62, %v1252_v61 }
  0x3e   :  { %4064 = vmatpush3.bf16.msra.mxu0 %v4621_v16  ;;  %4142 = vmatpush3.bf16.msra.mxu1 %v4715_v9  ;;  %v1270_v9 = vand.u32 4294901760, %v43_v7 }
  0x3f   :  { %4065 = vmatprep.subr.bf16.mxu0 %v4557_v3  ;;  %4143 = vmatprep.subr.bf16.mxu1 %v4557_v3 }
  0x40   :  { %3399 = vmatprep.mubr.msk.f32.mxu0 %vm4558_vm0, %v4559_v15  ;;  %v5013_v11 = vpack.c.bf16 %v1273_v10, %v1270_v9  ;;  %v5106_v10 = vsub.f32 %v4901_v49, %v1246_v54  ;;  %v5123_v49 = vsub.f32 %v4924_v59, %v1255_v62 }
  0x42   :  { %4067 = vmatpush3.bf16.msra.mxu0 %v4633_v23  ;;  %4145 = vmatpush3.bf16.msra.mxu1 %v4729_v30  ;;  %v1335_v14 = vand.u32 4294901760, %v5106_v10 }
  0x43   :  { %4068 = vmatprep.subr.bf16.mxu0 %v4557_v3  ;;  %4146 = vmatprep.subr.bf16.mxu1 %v4557_v3 }
  0x44   :  { %v1336_v54 = vsub.f32 %v5106_v10, %v1335_v14 }
  0x46   :  { %4070 = vmatpush3.bf16.msra.mxu0 %v4643_v28  ;;  %4148 = vmatpush3.bf16.msra.mxu1 %v4764_v24  ;;  %v5054_v24 = vsub.f32 %v43_v7, %v1270_v9  ;;  %v1337_v62 = vand.u32 4294901760, %v1336_v54 }
  0x47   :  { %4071 = vmatprep.subr.bf16.mxu0 %v4557_v3  ;;  %4149 = vmatprep.subr.bf16.mxu1 %v4557_v3 }
  0x48   :  { %v5097_v8 = vpack.c.bf16 %v5056_v25, %v5054_v24 }
  0x4a   :  { %4073 = vmatpush3.bf16.msra.mxu0 %v4660_v37  ;;  %4151 = vmatpush3.bf16.msra.mxu1 %v4042_v40 }
  0x4b   :  { %4074 = vmatprep.subr.bf16.mxu0 %v4557_v3  ;;  %4152 = vmatprep.subr.bf16.mxu1 %v4557_v3 }
  0x4d   :  { %3508 = vmatmul.mubr.f32.vlgmr.msra.gmra.mrb[2].mxu1 %v4778_v44 }
  0x4e   :  { %4076 = vmatpush3.bf16.msra.mxu0 %v4702_v1  ;;  %4154 = vmatpush3.bf16.msra.mxu1 %v4045_v52  ;;  %v1398_v52 = vand.u32 4294901760, %v5056_v25 }
  0x4f   :  { %4077 = vmatprep.subr.bf16.mxu0 %v4557_v3  ;;  %4155 = vmatprep.subr.bf16.mxu1 %v4557_v3 }
  0x50   :  { %3534 = vmatprep.mubr.msk.f32.mxu1 %vm4558_vm0, %v4559_v15 }
  0x52   :  { %4079 = vmatpush3.bf16.msra.mxu0 %v4727_v27  ;;  %4157 = vmatpush3.bf16.msra.mxu1 %v4048_v55 }
  0x53   :  { %4080 = vmatprep.subr.bf16.mxu0 %v4557_v3  ;;  %4158 = vmatprep.subr.bf16.mxu1 %v4557_v3 }
  0x55   :  { %3400 = vmatmul.mubr.f32.vlgmr.msra.gmra.mrb[0].mxu0 %v134_v13  ;;  %v45_v13 = vld [vmem:[%s5393_s3 + $0x50] sm:$0xff] }
  0x56   :  { %4082 = vmatpush3.bf16.msra.mxu0 %v4744_v41  ;;  %4160 = vmatpush3.bf16.msra.mxu1 %v4051_v18  ;;  %v1276_v19 = vand.u32 4294901760, %v45_v13 }
  0x57   :  { %4083 = vmatprep.subr.bf16.mxu0 %v4557_v3  ;;  %4161 = vmatprep.subr.bf16.mxu1 %v4557_v3 }
  0x58   :  { %3426 = vmatprep.mubr.msk.f32.mxu0 %vm4558_vm0, %v4559_v15  ;;  %v5025_v21 = vpack.c.bf16 %v1279_v20, %v1276_v19  ;;  %v5069_v18 = vsub.f32 %v45_v13, %v1276_v19 }
  0x5a   :  { %4085 = vmatpush3.bf16.msra.mxu0 %v4750_v43  ;;  %4163 = vmatpush3.bf16.msra.mxu1 %v4054_v26  ;;  %v5101_v9 = vpack.c.bf16 %v5071_v22, %v5069_v18 }
  0x5b   :  { %4086 = vmatprep.subr.bf16.mxu0 %v4557_v3  ;;  %4164 = vmatprep.subr.bf16.mxu1 %v4557_v3 }
  0x5e   :  { %4088 = vmatpush3.bf16.msra.mxu0 %v4754_v45  ;;  %4166 = vmatpush3.bf16.msra.mxu1 %v4057_v31 }
  0x5f   :  { %4089 = vmatprep.subr.bf16.mxu0 %v4557_v3  ;;  %4167 = vmatprep.subr.bf16.mxu1 %v4557_v3 }
  0x62   :  { %4091 = vmatpush3.bf16.msra.mxu0 %v4756_v46  ;;  %4169 = vmatpush3.bf16.msra.mxu1 %v4060_v35  ;;  %v1405_v35 = vand.u32 4294901760, %v5069_v18 }
  0x63   :  { %4092 = vmatprep.subr.bf16.mxu0 %v4557_v3  ;;  %4170 = vmatprep.subr.bf16.mxu1 %v4557_v3 }
  0x65   :  { %3535 = vmatmul.mubr.f32.vlgmr.msra.gmra.mrb[2].mxu1 %v4787_v53 }
  0x66   :  { %4094 = vmatpush3.bf16.msra.mxu0 %v4758_v47  ;;  %4172 = vmatpush3.bf16.msra.mxu1 %v4621_v16 }
  0x67   :  { %4095 = vmatprep.subr.bf16.mxu0 %v4557_v3  ;;  %4173 = vmatprep.subr.bf16.mxu1 %v4557_v3 }
  0x68   :  { %3561 = vmatprep.mubr.msk.f32.mxu1 %vm4558_vm0, %v4559_v15 }
  0x6a   :  { %4097 = vmatpush3.bf16.msra.mxu0 %v4760_v48  ;;  %4175 = vmatpush3.bf16.msra.mxu1 %v4633_v23 }
  0x6b   :  { %4098 = vmatprep.subr.bf16.mxu0 %v4557_v3  ;;  %4176 = vmatprep.subr.bf16.mxu1 %v4557_v3 }
  0x6d   :  { %3427 = vmatmul.mubr.f32.vlgmr.msra.gmra.mrb[0].mxu0 %v4698_v63 }
  0x6e   :  { %4100 = vmatpush3.bf16.msra.mxu0 %v4621_v16  ;;  %4178 = vmatpush3.bf16.msra.mxu1 %v4643_v28 }
  0x6f   :  { %4101 = vmatprep.subr.bf16.mxu0 %v4557_v3  ;;  %4179 = vmatprep.subr.bf16.mxu1 %v4557_v3 }
  0x70   :  { %3453 = vmatprep.mubr.msk.f32.mxu0 %vm4558_vm0, %v4559_v15 }
  0x72   :  { %4103 = vmatpush3.bf16.msra.mxu0 %v4633_v23  ;;  %4181 = vmatpush3.bf16.msra.mxu1 %v4660_v37 }
  0x73   :  { %4104 = vmatprep.subr.bf16.mxu0 %v4557_v3  ;;  %4182 = vmatprep.subr.bf16.mxu1 %v4557_v3 }
  0x76   :  { %4106 = vmatpush3.bf16.msra.mxu0 %v4643_v28  ;;  %4184 = vmatpush3.bf16.msra.mxu1 %v4702_v1 }
  0x77   :  { %4107 = vmatprep.subr.bf16.mxu0 %v4557_v3  ;;  %4185 = vmatprep.subr.bf16.mxu1 %v4557_v3 }
  0x7a   :  { %4109 = vmatpush3.bf16.msra.mxu0 %v4660_v37  ;;  %4187 = vmatpush3.bf16.msra.mxu1 %v4727_v27 }
  0x7b   :  { %4110 = vmatprep.subr.bf16.mxu0 %v4557_v3  ;;  %4188 = vmatprep.subr.bf16.mxu1 %v4557_v3 }
  0x7d   :  { %3562 = vmatmul.mubr.f32.vlgmr.msra.gmra.mrb[2].mxu1 %v726_v17  ;;  %v1399_v17 = vsub.f32 %v5056_v25, %v1398_v52 }
  0x7e   :  { %4112 = vmatpush3.bf16.msra.mxu0 %v4702_v1  ;;  %4190 = vmatpush3.bf16.msra.mxu1 %v4744_v41  ;;  %v5045_v41 = vsub.f32 %v42_v2, %v1267_v5 }
  0x7f   :  { %4113 = vmatprep.subr.bf16.mxu0 %v4557_v3  ;;  %4191 = vmatprep.subr.bf16.mxu1 %v4557_v3  ;;  %v1400_v31 = vand.u32 4294901760, %v1399_v17 }
  0x80   :  { %3588 = vmatprep.mubr.msk.f32.mxu1 %vm4558_vm0, %v4559_v15 }
  0x82   :  { %4115 = vmatpush3.bf16.msra.mxu0 %v4727_v27  ;;  %4193 = vmatpush3.bf16.msra.mxu1 %v4750_v43 }
  0x83   :  { %4194 = vmatprep.subr.bf16.mxu1 %v4557_v3  ;;  %4224 = vmatprep.subr.bf16.mxu0 %v4557_v3 }
  0x85   :  { %3454 = vmatmul.mubr.f32.vlgmr.msra.gmra.mrb[0].mxu0 %v4698_v63 }
  0x86   :  { %4196 = vmatpush3.bf16.msra.mxu1 %v4754_v45  ;;  %4226 = vmatpush3.bf16.msra.mxu0 %v4934_v60 }
  0x87   :  { %4197 = vmatprep.subr.bf16.mxu1 %v4557_v3  ;;  %4227 = vmatprep.subr.bf16.mxu0 %v4557_v3 }
  0x88   :  { %3642 = vmatprep.mubr.msk.f32.mxu0 %vm4558_vm0, %v4559_v15 }
  0x8a   :  { %4199 = vmatpush3.bf16.msra.mxu1 %v4756_v46  ;;  %4229 = vmatpush3.bf16.msra.mxu0 %v4947_v0  ;;  %v1384_v46 = vand.u32 4294901760, %v5045_v41 }
  0x8b   :  { %4200 = vmatprep.subr.bf16.mxu1 %v4557_v3  ;;  %4230 = vmatprep.subr.bf16.mxu0 %v4557_v3 }
  0x8c   :  { %v1385_v29 = vsub.f32 %v5045_v41, %v1384_v46 }
  0x8e   :  { %4202 = vmatpush3.bf16.msra.mxu1 %v4758_v47  ;;  %v1386_v53 = vand.u32 4294901760, %v1385_v29 }
  0x8f   :  { %4203 = vmatprep.subr.bf16.mxu1 %v4557_v3 }
  0x92   :  { %4205 = vmatpush3.bf16.msra.mxu1 %v4760_v48 }
  0x93   :  { %4206 = vmatprep.subr.bf16.mxu1 %v4557_v3 }
  0x95   :  { %3589 = vmatmul.mubr.f32.vlgmr.msra.gmra.mrb[2].mxu1 %v4778_v44 }
  0x96   :  { %4208 = vmatpush3.bf16.msra.mxu1 %v4621_v16  ;;  %3615 = vmatprep.mubr.msk.f32.mxu1 %vm4558_vm0, %v4559_v15  ;;  %v39_v16 = vld [vmem:[%s5393_s3 + $0x20] sm:$0xff] }
  0x97   :  { %4209 = vmatprep.subr.bf16.mxu1 %v4557_v3 }
  0x9a   :  { %4211 = vmatpush3.bf16.msra.mxu1 %v4633_v23  ;;  %v40_v23 = vld [vmem:[%s5393_s3 + $0x28] sm:$0xff] }
  0x9b   :  { %4212 = vmatprep.subr.bf16.mxu1 %v4557_v3 }
  0x9e   :  { %4214 = vmatpush3.bf16.msra.mxu1 %v4643_v28  ;;  %v1258_v28 = vand.u32 4294901760, %v39_v16 }
  0x9f   :  { %4215 = vmatprep.subr.bf16.mxu1 %v4557_v3 }
  0xa2   :  { %4217 = vmatpush3.bf16.msra.mxu1 %v4660_v37  ;;  %v1261_v37 = vand.u32 4294901760, %v40_v23 }
  0xa3   :  { %4218 = vmatprep.subr.bf16.mxu1 %v4557_v3 }
  0xa4   :  { %v4989_v63 = vpack.c.bf16 %v1261_v37, %v1258_v28  ;;  %v5033_v30 = vsub.f32 %v40_v23, %v1261_v37 }
  0xa6   :  { %4220 = vmatpush3.bf16.msra.mxu1 %v4702_v1  ;;  %v41_v1 = vld [vmem:[%s5393_s3 + $0x30] sm:$0xff]  ;;  %4232 = vmatpush3.bf16.msra.mxu0 %v4989_v63  ;;  %v1370_v33 = vand.u32 4294901760, %v5033_v30 }
  0xa7   :  { %4221 = vmatprep.subr.bf16.mxu1 %v4557_v3  ;;  %v1264_v4 = vand.u32 4294901760, %v41_v1  ;;  %4233 = vmatprep.subr.bf16.mxu0 %v4557_v3 }
  0xa8   :  { %v1371_v38 = vsub.f32 %v5033_v30, %v1370_v33 }
  0xa9   :  { %v5001_v6 = vpack.c.bf16 %v1267_v5, %v1264_v4  ;;  %v5043_v39 = vsub.f32 %v41_v1, %v1264_v4 }
  0xaa   :  { %4223 = vmatpush3.bf16.msra.mxu1 %v4727_v27  ;;  %v5031_v27 = vsub.f32 %v39_v16, %v1258_v28  ;;  %v1372_v43 = vand.u32 4294901760, %v1371_v38  ;;  %v1412_v16 = vand.u32 4294901760, %v5071_v22  ;;  %v1406_v28 = vsub.f32 %v5069_v18, %v1405_v35 }
  0xab   :  { %4332 = vmatprep.subr.bf16.mxu1 %v4557_v3  ;;  %4235 = vmatpush3.bf16.msra.mxu0 %v5001_v6  ;;  %v1377_v45 = vand.u32 4294901760, %v5043_v39  ;;  %v5093_v7 = vpack.c.bf16 %v5045_v41, %v5043_v39  ;;  %v5118_v38 = vsub.f32 %v4919_v58, %v1252_v61  ;;  %v1356_v61 = vand.u32 4294901760, %v5123_v49 }
  0xac   :  { %4236 = vmatprep.subr.bf16.mxu0 %v4557_v3  ;;  %v1363_v32 = vand.u32 4294901760, %v5031_v27  ;;  %v1413_v37 = vsub.f32 %v5071_v22, %v1412_v16  ;;  %v1407_v1 = vand.u32 4294901760, %v1406_v28  ;;  %v5089_v5 = vpack.c.bf16 %v5033_v30, %v5031_v27 }
  0xad   :  { %3616 = vmatmul.mubr.f32.vlgmr.msra.gmra.mrb[2].mxu1 %v4778_v44  ;;  %v1378_v48 = vsub.f32 %v5043_v39, %v1377_v45  ;;  %v1391_v44 = vand.u32 4294901760, %v5054_v24  ;;  %v1349_v58 = vand.u32 4294901760, %v5118_v38  ;;  %v1357_v29 = vsub.f32 %v5123_v49, %v1356_v61 }
  0xae   :  { %4334 = vmatpush3.bf16.msra.mxu1 %v4934_v60  ;;  %3804 = vmatprep.mubr.msk.f32.mxu1 %vm4558_vm0, %v4559_v15  ;;  %v1364_v36 = vsub.f32 %v5031_v27, %v1363_v32  ;;  %v1414_v2 = vand.u32 4294901760, %v1413_v37  ;;  %v4261_v28 = vpack.c.bf16 %v5111_v12, %v5106_v10  ;;  %v4312_v30 = vpack.c.bf16 %v1412_v16, %v1405_v35 }
  0xaf   :  { %4335 = vmatprep.subr.bf16.mxu1 %v4557_v3  ;;  %4238 = vmatpush3.bf16.msra.mxu0 %v5013_v11  ;;  %v1379_v40 = vand.u32 4294901760, %v1378_v48  ;;  %v1392_v55 = vsub.f32 %v5054_v24, %v1391_v44  ;;  %v1358_v17 = vand.u32 4294901760, %v1357_v29  ;;  %v4309_v27 = vpack.c.bf16 %v1398_v52, %v1391_v44 }
  0xb0   :  { %4239 = vmatprep.subr.bf16.mxu0 %v4557_v3  ;;  %v1365_v42 = vand.u32 4294901760, %v1364_v36  ;;  %v5085_v4 = vpack.c.bf16 %v1414_v2, %v1407_v1  ;;  %v1342_v36 = vand.u32 4294901760, %v5111_v12 }
  0xb1   :  { %v5073_v26 = vpack.c.bf16 %v1386_v53, %v1379_v40  ;;  %v1393_v56 = vand.u32 4294901760, %v1392_v55 }
  0xb2   :  { %4337 = vmatpush3.bf16.msra.mxu1 %v4947_v0  ;;  %v5049_v47 = vpack.c.bf16 %v1372_v43, %v1365_v42  ;;  %v1343_v42 = vsub.f32 %v5111_v12, %v1342_v36 }
  0xb3   :  { %4338 = vmatprep.subr.bf16.mxu1 %v4557_v3  ;;  %4241 = vmatpush3.bf16.msra.mxu0 %v5025_v21  ;;  %v5077_v23 = vpack.c.bf16 %v1400_v31, %v1393_v56 }
  0xb4   :  { %4242 = vmatprep.subr.bf16.mxu0 %v4557_v3  ;;  %v1344_v48 = vand.u32 4294901760, %v1343_v42 }
  0xb6   :  { %4340 = vmatpush3.bf16.msra.mxu1 %v4989_v63  ;;  %v4243_v53 = vpack.c.bf16 %v1344_v48, %v1337_v62 }
  0xb7   :  { %4341 = vmatprep.subr.bf16.mxu1 %v4557_v3 }
  0xba   :  { %4343 = vmatpush3.bf16.msra.mxu1 %v5001_v6 }
  0xbb   :  { %4344 = vmatprep.subr.bf16.mxu1 %v4557_v3 }
  0xbe   :  { %4346 = vmatpush3.bf16.msra.mxu1 %v5013_v11 }
  0xbf   :  { %4347 = vmatprep.subr.bf16.mxu1 %v4557_v3 }
  0xc2   :  { %4349 = vmatpush3.bf16.msra.mxu1 %v5025_v21 }
  0xc3   :  { %4350 = vmatprep.subr.bf16.mxu1 %v4557_v3 }
  0xf0   :  { %v138_v50 = vpop.f32.mrb[0].mxu1 }
  0xf1   :  { %v3320_v34 = vpop.f32.mrb[1].mxu1 }
 0x158   :  { %v640_v13 = vpop.f32.mrb[0].mxu0 }
 0x159   :  { %v4476_v19 = vadd.f32 %v640_v13, %v138_v50  ;;  %v3455_v20 = vpop.f32.mrb[1].mxu0  ;;  %v1350_v50 = vsub.f32 %v5118_v38, %v1349_v58  ;;  %v4264_v13 = vpack.c.bf16 %v5123_v49, %v5118_v38 }
 0x15b   :  { %v1236_v51 = vmul.f32 %v4476_v19, %v4476_v19  ;;  %v1351_v55 = vand.u32 4294901760, %v1350_v50 }
 0x15d   :  { %v1239_v57 = vsel %vm1237_vm3, %v1236_v51, 0  ;;  %v4246_v31 = vpack.c.bf16 %v1358_v17, %v1351_v55 }
 0x15e   :  { %v5134_v43 = vand.u32 4294901760, %v1239_v57 }
 0x160   :  { %v5137_v59 = vsub.f32 %v1239_v57, %v5134_v43 }
 0x162   :  { %v1324_v34 = vand.u32 4294901760, %v5137_v59 }
 0x164   :  { %v1325_v40 = vsub.f32 %v5137_v59, %v1324_v34 }
 0x166   :  { %v1326_v56 = vand.u32 4294901760, %v1325_v40 }
 0x168   :  { %3643 = vmatmul.mubr.f32.vlgmr.msra.gmra.mrb[2].mxu0 %v1326_v56 }
 0x169   :  { %4244 = vmatpush3.bf16.msra.mxu0 %v4243_v53  ;;  %3669 = vmatprep.mubr.msk.f32.mxu0 %vm4558_vm0, %v4559_v15 }
 0x16a   :  { %4245 = vmatprep.subr.bf16.mxu0 %v4557_v3 }
 0x16d   :  { %4247 = vmatpush3.bf16.msra.mxu0 %v4246_v31 }
 0x16e   :  { %4248 = vmatprep.subr.bf16.mxu0 %v4557_v3 }
 0x171   :  { %4250 = vmatpush3.bf16.msra.mxu0 %v5049_v47 }
 0x172   :  { %4251 = vmatprep.subr.bf16.mxu0 %v4557_v3 }
 0x175   :  { %4253 = vmatpush3.bf16.msra.mxu0 %v5073_v26 }
 0x176   :  { %4254 = vmatprep.subr.bf16.mxu0 %v4557_v3 }
 0x179   :  { %4256 = vmatpush3.bf16.msra.mxu0 %v5077_v23 }
 0x17a   :  { %4257 = vmatprep.subr.bf16.mxu0 %v4557_v3 }
 0x17d   :  { %4259 = vmatpush3.bf16.msra.mxu0 %v5085_v4 }
 0x17e   :  { %4260 = vmatprep.subr.bf16.mxu0 %v4557_v3 }
 0x180   :  { %3670 = vmatmul.mubr.f32.vlgmr.msra.gmra.mrb[2].mxu0 %v5134_v43  ;;  %v1232_v37 = vpop.f32.mrb[2].mxu1 }
 0x181   :  { %v1834_v1 = vmul.f32 %v1232_v37, %v1232_v37  ;;  %4262 = vmatpush3.bf16.msra.mxu0 %v4261_v28  ;;  %v3617_v2 = vpop.f32.mrb[3].mxu1  ;;  %3696 = vmatprep.mubr.msk.f32.mxu0 %vm4558_vm0, %v4559_v15 }
 0x182   :  { %4263 = vmatprep.subr.bf16.mxu0 %v4557_v3 }
 0x183   :  { %v1836_v19 = vsel %vm1237_vm3, %v1834_v1, 0 }
 0x184   :  { %v5170_v20 = vand.u32 4294901760, %v1836_v19 }
 0x185   :  { %4265 = vmatpush3.bf16.msra.mxu0 %v4264_v13 }
 0x186   :  { %v5173_v51 = vsub.f32 %v1836_v19, %v5170_v20  ;;  %4266 = vmatprep.subr.bf16.mxu0 %v4557_v3 }
 0x188   :  { %v1917_v54 = vand.u32 4294901760, %v5173_v51 }
 0x189   :  { %4268 = vmatpush3.bf16.msra.mxu0 %v5089_v5 }
 0x18a   :  { %4269 = vmatprep.subr.bf16.mxu0 %v4557_v3  ;;  %v1918_v57 = vsub.f32 %v5173_v51, %v1917_v54 }
 0x18c   :  { %v1919_v42 = vand.u32 4294901760, %v1918_v57 }
 0x18d   :  { %4271 = vmatpush3.bf16.msra.mxu0 %v5093_v7 }
 0x18e   :  { %3805 = vmatmul.mubr.f32.vlgmr.msra.gmra.mrb[4].mxu1 %v1919_v42  ;;  %4272 = vmatprep.subr.bf16.mxu0 %v4557_v3 }
 0x18f   :  { %4352 = vmatpush3.bf16.msra.mxu1 %v4243_v53  ;;  %3831 = vmatprep.mubr.msk.f32.mxu1 %vm4558_vm0, %v4559_v15 }
 0x190   :  { %4353 = vmatprep.subr.bf16.mxu1 %v4557_v3 }
 0x191   :  { %4274 = vmatpush3.bf16.msra.mxu0 %v5097_v8 }
 0x192   :  { %4275 = vmatprep.subr.bf16.mxu0 %v4557_v3 }
 0x193   :  { %4355 = vmatpush3.bf16.msra.mxu1 %v4246_v31 }
 0x194   :  { %4356 = vmatprep.subr.bf16.mxu1 %v4557_v3 }
 0x195   :  { %4277 = vmatpush3.bf16.msra.mxu0 %v5101_v9 }
 0x196   :  { %4278 = vmatprep.subr.bf16.mxu0 %v4557_v3 }
 0x197   :  { %4358 = vmatpush3.bf16.msra.mxu1 %v5049_v47  ;;  %v4297_v47 = vpack.c.bf16 %v1342_v36, %v1335_v14 }
 0x198   :  { %3697 = vmatmul.mubr.f32.vlgmr.msra.gmra.mrb[2].mxu0 %v5137_v59  ;;  %4359 = vmatprep.subr.bf16.mxu1 %v4557_v3 }
 0x199   :  { %4280 = vmatpush3.bf16.msra.mxu0 %v4934_v60  ;;  %3723 = vmatprep.mubr.msk.f32.mxu0 %vm4558_vm0, %v4559_v15 }
 0x19a   :  { %4281 = vmatprep.subr.bf16.mxu0 %v4557_v3 }
 0x19b   :  { %4361 = vmatpush3.bf16.msra.mxu1 %v5073_v26  ;;  %v4300_v26 = vpack.c.bf16 %v1356_v61, %v1349_v58 }
 0x19c   :  { %4362 = vmatprep.subr.bf16.mxu1 %v4557_v3 }
 0x19d   :  { %4283 = vmatpush3.bf16.msra.mxu0 %v4947_v0 }
 0x19e   :  { %4284 = vmatprep.subr.bf16.mxu0 %v4557_v3 }
 0x19f   :  { %4364 = vmatpush3.bf16.msra.mxu1 %v5077_v23  ;;  %v4303_v23 = vpack.c.bf16 %v1370_v33, %v1363_v32 }
 0x1a0   :  { %4365 = vmatprep.subr.bf16.mxu1 %v4557_v3 }
 0x1a1   :  { %4286 = vmatpush3.bf16.msra.mxu0 %v4989_v63 }
 0x1a2   :  { %4287 = vmatprep.subr.bf16.mxu0 %v4557_v3 }
 0x1a3   :  { %4367 = vmatpush3.bf16.msra.mxu1 %v5085_v4  ;;  %v4306_v4 = vpack.c.bf16 %v1384_v46, %v1377_v45 }
 0x1a4   :  { %4368 = vmatprep.subr.bf16.mxu1 %v4557_v3 }
 0x1a5   :  { %4289 = vmatpush3.bf16.msra.mxu0 %v5001_v6 }
 0x1a6   :  { %3832 = vmatmul.mubr.f32.vlgmr.msra.gmra.mrb[4].mxu1 %v5170_v20  ;;  %4290 = vmatprep.subr.bf16.mxu0 %v4557_v3 }
 0x1a7   :  { %4370 = vmatpush3.bf16.msra.mxu1 %v4261_v28  ;;  %3858 = vmatprep.mubr.msk.f32.mxu1 %vm4558_vm0, %v4559_v15 }
 0x1a8   :  { %4371 = vmatprep.subr.bf16.mxu1 %v4557_v3 }
 0x1a9   :  { %4292 = vmatpush3.bf16.msra.mxu0 %v5013_v11 }
 0x1aa   :  { %4293 = vmatprep.subr.bf16.mxu0 %v4557_v3 }
 0x1ab   :  { %4373 = vmatpush3.bf16.msra.mxu1 %v4264_v13 }
 0x1ac   :  { %4374 = vmatprep.subr.bf16.mxu1 %v4557_v3 }
 0x1ad   :  { %4295 = vmatpush3.bf16.msra.mxu0 %v5025_v21 }
 0x1ae   :  { %4296 = vmatprep.subr.bf16.mxu0 %v4557_v3 }
 0x1af   :  { %4376 = vmatpush3.bf16.msra.mxu1 %v5089_v5 }
 0x1b0   :  { %3724 = vmatmul.mubr.f32.vlgmr.msra.gmra.mrb[2].mxu0 %v1324_v34  ;;  %4377 = vmatprep.subr.bf16.mxu1 %v4557_v3 }
 0x1b1   :  { %4298 = vmatpush3.bf16.msra.mxu0 %v4297_v47  ;;  %3750 = vmatprep.mubr.msk.f32.mxu0 %vm4558_vm0, %v4559_v15 }
 0x1b2   :  { %4299 = vmatprep.subr.bf16.mxu0 %v4557_v3 }
 0x1b3   :  { %4379 = vmatpush3.bf16.msra.mxu1 %v5093_v7 }
 0x1b4   :  { %4380 = vmatprep.subr.bf16.mxu1 %v4557_v3 }
 0x1b5   :  { %4301 = vmatpush3.bf16.msra.mxu0 %v4300_v26 }
 0x1b6   :  { %4302 = vmatprep.subr.bf16.mxu0 %v4557_v3 }
 0x1b7   :  { %4382 = vmatpush3.bf16.msra.mxu1 %v5097_v8 }
 0x1b8   :  { %4383 = vmatprep.subr.bf16.mxu1 %v4557_v3 }
 0x1b9   :  { %4304 = vmatpush3.bf16.msra.mxu0 %v4303_v23 }
 0x1ba   :  { %4305 = vmatprep.subr.bf16.mxu0 %v4557_v3 }
 0x1bb   :  { %4385 = vmatpush3.bf16.msra.mxu1 %v5101_v9 }
 0x1bc   :  { %4386 = vmatprep.subr.bf16.mxu1 %v4557_v3 }
 0x1bd   :  { %4307 = vmatpush3.bf16.msra.mxu0 %v4306_v4 }
 0x1be   :  { %3859 = vmatmul.mubr.f32.vlgmr.msra.gmra.mrb[4].mxu1 %v5173_v51  ;;  %4308 = vmatprep.subr.bf16.mxu0 %v4557_v3 }
 0x1bf   :  { %4388 = vmatpush3.bf16.msra.mxu1 %v4934_v60  ;;  %3885 = vmatprep.mubr.msk.f32.mxu1 %vm4558_vm0, %v4559_v15 }
 0x1c0   :  { %4389 = vmatprep.subr.bf16.mxu1 %v4557_v3 }
 0x1c1   :  { %4310 = vmatpush3.bf16.msra.mxu0 %v4309_v27 }
 0x1c2   :  { %4311 = vmatprep.subr.bf16.mxu0 %v4557_v3 }
 0x1c3   :  { %4391 = vmatpush3.bf16.msra.mxu1 %v4947_v0 }
 0x1c4   :  { %4392 = vmatprep.subr.bf16.mxu1 %v4557_v3 }
 0x1c5   :  { %4313 = vmatpush3.bf16.msra.mxu0 %v4312_v30 }
 0x1c6   :  { %4314 = vmatprep.subr.bf16.mxu0 %v4557_v3 }
 0x1c7   :  { %4394 = vmatpush3.bf16.msra.mxu1 %v4989_v63 }
 0x1c8   :  { %3751 = vmatmul.mubr.f32.vlgmr.msra.gmra.mrb[2].mxu0 %v5134_v43  ;;  %4395 = vmatprep.subr.bf16.mxu1 %v4557_v3 }
 0x1c9   :  { %4316 = vmatpush3.bf16.msra.mxu0 %v4934_v60  ;;  %3777 = vmatprep.mubr.msk.f32.mxu0 %vm4558_vm0, %v4559_v15 }
 0x1ca   :  { %4317 = vmatprep.subr.bf16.mxu0 %v4557_v3 }
 0x1cb   :  { %4397 = vmatpush3.bf16.msra.mxu1 %v5001_v6 }
 0x1cc   :  { %4398 = vmatprep.subr.bf16.mxu1 %v4557_v3 }
 0x1cd   :  { %4319 = vmatpush3.bf16.msra.mxu0 %v4947_v0 }
 0x1ce   :  { %4320 = vmatprep.subr.bf16.mxu0 %v4557_v3 }
 0x1cf   :  { %4400 = vmatpush3.bf16.msra.mxu1 %v5013_v11 }
 0x1d0   :  { %4401 = vmatprep.subr.bf16.mxu1 %v4557_v3 }
 0x1d1   :  { %4322 = vmatpush3.bf16.msra.mxu0 %v4989_v63 }
 0x1d2   :  { %4323 = vmatprep.subr.bf16.mxu0 %v4557_v3 }
 0x1d3   :  { %4403 = vmatpush3.bf16.msra.mxu1 %v5025_v21 }
 0x1d4   :  { %4404 = vmatprep.subr.bf16.mxu1 %v4557_v3 }
 0x1d5   :  { %4325 = vmatpush3.bf16.msra.mxu0 %v5001_v6 }
 0x1d6   :  { %3886 = vmatmul.mubr.f32.vlgmr.msra.gmra.mrb[4].mxu1 %v1917_v54  ;;  %4326 = vmatprep.subr.bf16.mxu0 %v4557_v3 }
 0x1d7   :  { %4406 = vmatpush3.bf16.msra.mxu1 %v4297_v47  ;;  %3912 = vmatprep.mubr.msk.f32.mxu1 %vm4558_vm0, %v4559_v15 }
 0x1d8   :  { %4407 = vmatprep.subr.bf16.mxu1 %v4557_v3 }
 0x1d9   :  { %4328 = vmatpush3.bf16.msra.mxu0 %v5013_v11 }
 0x1da   :  { %4329 = vmatprep.subr.bf16.mxu0 %v4557_v3 }
 0x1db   :  { %4409 = vmatpush3.bf16.msra.mxu1 %v4300_v26 }
 0x1dc   :  { %4410 = vmatprep.subr.bf16.mxu1 %v4557_v3 }
 0x1dd   :  { %4331 = vmatpush3.bf16.msra.mxu0 %v5025_v21 }
 0x1de   :  { %4440 = vmatprep.subr.bf16.mxu0 %v4557_v3 }
 0x1df   :  { %4412 = vmatpush3.bf16.msra.mxu1 %v4303_v23 }
 0x1e0   :  { %3778 = vmatmul.mubr.f32.vlgmr.msra.gmra.mrb[2].mxu0 %v5134_v43  ;;  %4413 = vmatprep.subr.bf16.mxu1 %v4557_v3 }
 0x1e1   :  { %3950 = vmatprep.mubr.msk.f32.mxu0 %vm4558_vm0, %v4559_v15 }
 0x1e3   :  { %4415 = vmatpush3.bf16.msra.mxu1 %v4306_v4 }
 0x1e4   :  { %4416 = vmatprep.subr.bf16.mxu1 %v4557_v3 }
 0x1e7   :  { %4418 = vmatpush3.bf16.msra.mxu1 %v4309_v27 }
 0x1e8   :  { %4419 = vmatprep.subr.bf16.mxu1 %v4557_v3 }
 0x1eb   :  { %4421 = vmatpush3.bf16.msra.mxu1 %v4312_v30 }
 0x1ec   :  { %4422 = vmatprep.subr.bf16.mxu1 %v4557_v3 }
 0x1ee   :  { %3913 = vmatmul.mubr.f32.vlgmr.msra.gmra.mrb[4].mxu1 %v5170_v20 }
 0x1ef   :  { %4424 = vmatpush3.bf16.msra.mxu1 %v4934_v60  ;;  %3939 = vmatprep.mubr.msk.f32.mxu1 %vm4558_vm0, %v4559_v15  ;;  %v47_v60 = vld [vmem:[%s5394_s4] sm:$0xff] }
 0x1f0   :  { %4425 = vmatprep.subr.bf16.mxu1 %v4557_v3 }
 0x1f3   :  { %4427 = vmatpush3.bf16.msra.mxu1 %v4947_v0  ;;  %v48_v0 = vld [vmem:[%s5394_s4 + $0x8] sm:$0xff] }
 0x1f4   :  { %4428 = vmatprep.subr.bf16.mxu1 %v4557_v3 }
 0x1f7   :  { %4430 = vmatpush3.bf16.msra.mxu1 %v4989_v63  ;;  %v49_v63 = vld [vmem:[%s5394_s4 + $0x10] sm:$0xff] }
 0x1f8   :  { %4431 = vmatprep.subr.bf16.mxu1 %v4557_v3  ;;  %v2458_v32 = vand.u32 4294901760, %v49_v63 }
 0x1fa   :  { %v5338_v24 = vsub.f32 %v49_v63, %v2458_v32 }
 0x1fb   :  { %4433 = vmatpush3.bf16.msra.mxu1 %v5001_v6  ;;  %v2452_v6 = vand.u32 4294901760, %v47_v60 }
 0x1fc   :  { %4434 = vmatprep.subr.bf16.mxu1 %v4557_v3  ;;  %v2547_v7 = vand.u32 4294901760, %v5338_v24 }
 0x1fd   :  { %v5334_v41 = vsub.f32 %v47_v60, %v2452_v6 }
 0x1fe   :  { %v2548_v10 = vsub.f32 %v5338_v24, %v2547_v7 }
 0x1ff   :  { %4436 = vmatpush3.bf16.msra.mxu1 %v5013_v11  ;;  %v2455_v11 = vand.u32 4294901760, %v48_v0  ;;  %v2533_v52 = vand.u32 4294901760, %v5334_v41 }
 0x200   :  { %4437 = vmatprep.subr.bf16.mxu1 %v4557_v3  ;;  %v2549_v14 = vand.u32 4294901760, %v2548_v10 }
 0x201   :  { %v5332_v39 = vpack.c.bf16 %v2455_v11, %v2452_v6  ;;  %v5336_v45 = vsub.f32 %v48_v0, %v2455_v11  ;;  %v2534_v22 = vsub.f32 %v5334_v41, %v2533_v52 }
 0x203   :  { %4439 = vmatpush3.bf16.msra.mxu1 %v5025_v21  ;;  %v50_v21 = vld [vmem:[%s5394_s4 + $0x18] sm:$0x3f]  ;;  %4442 = vmatpush3.bf16.msra.mxu0 %v5332_v39  ;;  %v2540_v18 = vand.u32 4294901760, %v5336_v45  ;;  %v2535_v16 = vand.u32 4294901760, %v2534_v22  ;;  %v4453_v49 = vpack.c.bf16 %v5336_v45, %v5334_v41  ;;  %s4560_s4 = smov [#allocation2]  }
 0x204   :  { %v2449_v33 = vsel %vm2447_vm4, %v50_v21, 0  ;;  %4443 = vmatprep.subr.bf16.mxu0 %v4557_v3  ;;  %s2944_s21 = sshll.u32 %s4560_s4, 4  ;;  %s2945_s21 = int_to_ptr.vmem [resolvable:$true] %s2944_s21 }
 0x205   :  { %v2461_v46 = vand.u32 4294901760, %v2449_v33  ;;  %v2541_v35 = vsub.f32 %v5336_v45, %v2540_v18  ;;  %v4465_v61 = vpack.c.bf16 %v2540_v18, %v2533_v52  ;;  %s4533_s22 = scalar_lea.vmem %s2945_s21, 16  ;;  %s4537_s23 = scalar_lea.vmem %s2945_s21, 32 }
 0x206   :  { %3940 = vmatmul.mubr.f32.vlgmr.msra.gmra.mrb[4].mxu1 %v5170_v20  ;;  %p4534_p0 = scmp.ne.s32.totalorder %s2945_s21, %s4533_s22  ;;  %p4538_p1 = scmp.lt.s32.totalorder %s2945_s21, %s2945_s21 }
 0x207   :  { %v5341_v25 = vpack.c.bf16 %v2461_v46, %v2458_v32  ;;  %v2553_v44 = vsub.f32 %v2449_v33, %v2461_v46  ;;  %v2542_v5 = vand.u32 4294901760, %v2541_v35  ;;  %p4539_p2 = scmp.lt.s32.totalorder %s4537_s23, %s4533_s22 }
 0x209   :  { %4445 = vmatpush3.bf16.msra.mxu0 %v5341_v25  ;;  %v2554_v8 = vand.u32 4294901760, %v2553_v44  ;;  %v4447_v9 = vpack.c.bf16 %v2542_v5, %v2535_v16  ;;  %v4456_v58 = vpack.c.bf16 %v2553_v44, %v5338_v24  ;;  %p4540_p3 = por %p4539_p2, %p4538_p1 }
 0x20a   :  { %4446 = vmatprep.subr.bf16.mxu0 %v4557_v3 }
 0x20b   :  { %v2555_v12 = vsub.f32 %v2553_v44, %v2554_v8  ;;  %v4468_v43 = vpack.c.bf16 %v2554_v8, %v2547_v7  ;;  %p4541_p4 = pnand %p4540_p3, %p4534_p0 }
 0x20d   :  { %v2556_v36 = vand.u32 4294901760, %v2555_v12 }
 0x20f   :  { %v4450_v38 = vpack.c.bf16 %v2556_v36, %v2549_v14 }
 0x2b3   :  { %v1830_v59 = vpop.f32.mrb[2].mxu0 }
 0x2b4   :  { %v3779_v62 = vpop.f32.mrb[3].mxu0  ;;  %4529 = vrsqrt.f32 %v1830_v59  ;;  %vm2429_vm5 = vcmp.eq.f32.partialorder %v1830_v59, inf  ;;  %v2432_v17 = vand.u32 2147483648, %v1830_v59  ;;  %vm2431_vm7 = vcmp.eq.f32.partialorder %v1830_v59, 0.0 }
 0x2be   :  { %v4530_v29 = vpop.eup %4529 }
 0x2bf   :  { %v2428_v34 = vmul.f32 %v4530_v29, %v1830_v59 }
 0x2c1   :  { %v2430_v53 = vsel %vm2429_vm5, %v1830_v59, %v2428_v34 }
 0x2c2   :  { %v2433_v28 = vsel %vm2431_vm7, %v2432_v17, %v2430_v53 }
 0x2d9   :  { %v2423_v48 = vpop.f32.mrb[4].mxu1 }
 0x2da   :  { %4531 = vrsqrt.f32 %v2423_v48  ;;  %v3941_v50 = vpop.f32.mrb[5].mxu1  ;;  %vm2436_vm6 = vcmp.eq.f32.partialorder %v2423_v48, inf  ;;  %v2439_v56 = vand.u32 2147483648, %v2423_v48  ;;  %vm2438_vm8 = vcmp.eq.f32.partialorder %v2423_v48, 0.0 }
 0x2e4   :  { %v4532_v40 = vpop.eup %4531 }
 0x2e5   :  { %v2435_v55 = vmul.f32 %v4532_v40, %v2423_v48 }
 0x2e7   :  { %v2437_v31 = vsel %vm2436_vm6, %v2423_v48, %v2435_v55 }
 0x2e8   :  { %v2440_v37 = vsel %vm2438_vm8, %v2439_v56, %v2437_v31 }
 0x2e9   :  { %v2441_v1 = vsub.f32 %v2433_v28, %v2440_v37 }
 0x2eb   :  { %v2442_v2 = vmul.f32 %v2441_v1, %v2441_v1 }
 0x2ed   :  { %v2445_v13 = vsel %vm2443_vm9, %v2442_v2, 0 }
 0x2ee   :  { %v2520_v19 = vand.u32 4294901760, %v2445_v13 }
 0x2f0   :  { %v2521_v20 = vsub.f32 %v2445_v13, %v2520_v19 }
 0x2f2   :  { %v2522_v51 = vand.u32 4294901760, %v2521_v20 }
 0x2f4   :  { %v2523_v54 = vsub.f32 %v2521_v20, %v2522_v51 }
 0x2f6   :  { %v2524_v57 = vand.u32 4294901760, %v2523_v54 }
 0x2f8   :  { %3951 = vmatmul.mubr.f32.vlgmr.msra.gmra.mrb[4].mxu0 %v2524_v57 }
 0x2f9   :  { %4448 = vmatpush3.bf16.msra.mxu0 %v4447_v9  ;;  %3961 = vmatprep.mubr.msk.f32.mxu0 %vm4558_vm0, %v4559_v15 }
 0x2fa   :  { %4449 = vmatprep.subr.bf16.mxu0 %v4557_v3 }
 0x2fd   :  { %4451 = vmatpush3.bf16.msra.mxu0 %v4450_v38 }
 0x2fe   :  { %4452 = vmatprep.subr.bf16.mxu0 %v4557_v3 }
 0x300   :  { %3962 = vmatmul.mubr.f32.vlgmr.msra.gmra.mrb[4].mxu0 %v2520_v19 }
 0x301   :  { %4454 = vmatpush3.bf16.msra.mxu0 %v4453_v49  ;;  %3972 = vmatprep.mubr.msk.f32.mxu0 %vm4558_vm0, %v4559_v15 }
 0x302   :  { %4455 = vmatprep.subr.bf16.mxu0 %v4557_v3 }
 0x305   :  { %4457 = vmatpush3.bf16.msra.mxu0 %v4456_v58 }
 0x306   :  { %4458 = vmatprep.subr.bf16.mxu0 %v4557_v3 }
 0x308   :  { %3973 = vmatmul.mubr.f32.vlgmr.msra.gmra.mrb[4].mxu0 %v2521_v20 }
 0x309   :  { %4460 = vmatpush3.bf16.msra.mxu0 %v5332_v39  ;;  %3983 = vmatprep.mubr.msk.f32.mxu0 %vm4558_vm0, %v4559_v15 }
 0x30a   :  { %4461 = vmatprep.subr.bf16.mxu0 %v4557_v3 }
 0x30d   :  { %4463 = vmatpush3.bf16.msra.mxu0 %v5341_v25 }
 0x30e   :  { %4464 = vmatprep.subr.bf16.mxu0 %v4557_v3 }
 0x310   :  { %3984 = vmatmul.mubr.f32.vlgmr.msra.gmra.mrb[4].mxu0 %v2522_v51 }
 0x311   :  { %4466 = vmatpush3.bf16.msra.mxu0 %v4465_v61  ;;  %3994 = vmatprep.mubr.msk.f32.mxu0 %vm4558_vm0, %v4559_v15 }
 0x312   :  { %4467 = vmatprep.subr.bf16.mxu0 %v4557_v3 }
 0x315   :  { %4469 = vmatpush3.bf16.msra.mxu0 %v4468_v43 }
 0x316   :  { %4470 = vmatprep.subr.bf16.mxu0 %v4557_v3 }
 0x318   :  { %3995 = vmatmul.mubr.f32.vlgmr.msra.gmra.mrb[4].mxu0 %v2520_v19 }
 0x319   :  { %4472 = vmatpush3.bf16.msra.mxu0 %v5332_v39  ;;  %4005 = vmatprep.mubr.msk.f32.mxu0 %vm4558_vm0, %v4559_v15 }
 0x31a   :  { %4473 = vmatprep.subr.bf16.mxu0 %v4557_v3 }
 0x31d   :  { %4475 = vmatpush3.bf16.msra.mxu0 %v5341_v25 }
 0x320   :  { %4006 = vmatmul.mubr.f32.vlgmr.msra.gmra.mrb[4].mxu0 %v2520_v19 }
 0x3f3   :  { %v2932_v42 = vpop.f32.mrb[4].mxu0 }
 0x3f4   :  { %2937 = vst.msk [vmem:[#allocation2] sm:$0x1] %vm2936_vm10, %v2932_v42  ;;  %v4007_v47 = vpop.f32.mrb[5].mxu0 }
 0x3f5   :  { %4544 = shalt.err (!%p4541_p4)
}
 0x3f6   :  { %s4545_s26 = scalar_lea.hbm %s5395_s5, 16 }
 0x3f7   :  { %p4546_p5 = scmp.ne.s32.totalorder %s5395_s5, %s4545_s26  ;;  %p4549_p6 = scmp.lt.u32.totalorder %s4545_s26, %s5395_s5 }
 0x3f9   :  { %p4551_p7 = pnand %p4549_p6, %p4546_p5 }
 0x3fb   :  { %4554 = shalt.err (!%p4551_p7)
}
 0x3fc   :  { %2947 = dma.vmem_to_hbm [thread:$0]  %s2945_s21, 16, %s5395_s5, [#allocation3]  }
 0x3fd   :  { %4555 = dma.done.wait [#allocation3], 16  }
 0x3fe   :  { %4556 = vsyncadd [#allocation3], 4294967280 }
 0x3ff   :  { %2951 = vsyncpa [#allocation3], 1 }

</bundles_post_ra>
